<compile_context>
chip_gen: v5e
topology: v5e:2x2
jax: 0.10.0
libtpu: 0.0.40
codegen_flags: <defaults>
</compile_context>

<pallas_src>
import functools

import jax
import jax.numpy as jnp
from jax.experimental import pallas as pl
from jax.experimental.pallas import tpu as pltpu


def _fromrgb_kernel(x_ref, w_ref, b_ref, o_ref, *, ic, slope):
    """One grid step == (one batch element, one HW tile).

    x_ref : (1, IC, THW)  flattened input tile
    w_ref : (OC, IC)      1x1 conv weight
    b_ref : (OC, 1)       fused bias (conv bias + module's extra bias)
    o_ref : (1, OC, THW)  output tile
    """
    x = x_ref[0].astype(jnp.float32)          # (IC, THW)
    w = w_ref[...].astype(jnp.float32)        # (OC, IC)

    # K=3, M=OC is a terrible MXU shape; do the channel mix on the VPU:
    # IC broadcast multiply-adds of (OC,1) * (1,THW) with f32 accumulation.
    y = None
    for i in range(ic):                        # ic is static (3) -> unrolled
        term = w[:, i:i + 1] * x[i:i + 1, :]   # (OC, THW)
        y = term if y is None else y + term

    y = y + b_ref[...].astype(jnp.float32)     # fused conv + extra bias
    o_ref[0] = jnp.where(y >= 0.0, y, y * slope).astype(o_ref.dtype)


def _pad8(n):
    return -(-n // 8) * 8


def _round_up(n, m):
    return -(-n // m) * m


def _vmem_info():
    """(per-step working-set budget, scoped-VMEM limit to request)."""
    try:
        cap = int(pltpu.get_tpu_info().vmem_capacity_bytes)
    except Exception:  # be robust if the query is unavailable
        cap = 64 << 20  # conservative: v7x per-TensorCore VMEM
    budget = min(max(cap // 3, 8 << 20), 28 << 20)
    vlim = min(int(cap * 0.9), 100 << 20)
    return budget, int(vlim)


def _pick_hw_tile(hw, bytes_per_lane, budget):
    """Lane-dense tile (multiple of 128) sized against the VMEM budget.

    Returns (thw, hw_total) with hw_total = n_tiles * thw >= hw."""
    hw_pad = _round_up(hw, 128)
    max_lanes = max(128, (budget // bytes_per_lane) // 128 * 128)
    max_lanes = min(max_lanes, 128 * 1024)     # 32K-128K lane target range
    if hw_pad <= max_lanes:
        return hw_pad, hw_pad
    # Prefer a tile that divides the padded extent (no extra padding).
    t = max_lanes
    while t >= 128:
        if hw_pad % t == 0:
            return t, hw_pad
        t -= 128
    # Otherwise tile at the cap and pad the spatial axis up to a multiple.
    return max_lanes, _round_up(hw_pad, max_lanes)


def from_rgb(x, conv_w, conv_b, bias, *, slope=0.2):
    """x: (B, 3, H, W), conv_w: (OC, 3, 1, 1), conv_b: (OC,),
    bias: (1, OC, 1, 1).  Returns (B, OC, H, W)."""
    b, ic, h, w = x.shape
    oc = conv_w.shape[0]
    assert conv_w.shape == (oc, ic, 1, 1)
    hw = h * w

    itemsize = jnp.dtype(x.dtype).itemsize
    # Per-lane VMEM cost: double-buffered in/out tiles + f32 intermediates.
    bytes_per_lane = (2 * _pad8(ic) * itemsize
                      + 2 * _pad8(oc) * itemsize
                      + _pad8(ic) * 4 + _pad8(oc) * 4)
    budget, vlim = _vmem_info()
    thw, hw_total = _pick_hw_tile(hw, bytes_per_lane, budget)
    n_hw = hw_total // thw

    # ---- layout-only glue (all math is in the kernel) ----------------------
    x_flat = x.reshape(b, ic, hw)                         # (B, IC, HW)
    if hw_total != hw:
        x_flat = jnp.pad(x_flat, ((0, 0), (0, 0), (0, hw_total - hw)))
    w2d = conv_w.reshape(oc, ic)                          # (OC, IC)
    fbias = conv_b.reshape(oc, 1) + bias.reshape(oc, 1)   # fold both biases

    out_flat = pl.pallas_call(
        functools.partial(_fromrgb_kernel, ic=ic, slope=slope),
        out_shape=jax.ShapeDtypeStruct((b, oc, hw_total), x.dtype),
        grid=(b, n_hw),
        in_specs=[
            pl.BlockSpec((1, ic, thw), lambda i, j: (i, 0, j)),
            # Weight / fused bias are grid-invariant and sub-KB; their block
            # index never changes so Pallas fetches them once -- extra
            # buffering control would save only a few hundred bytes.
            pl.BlockSpec((oc, ic), lambda i, j: (0, 0)),
            pl.BlockSpec((oc, 1), lambda i, j: (0, 0)),
        ],
        out_specs=pl.BlockSpec((1, oc, thw), lambda i, j: (i, 0, j)),
        compiler_params=pltpu.CompilerParams(
            dimension_semantics=("parallel", "parallel"),
            vmem_limit_bytes=vlim),
    )(x_flat, w2d, fbias)

    if hw_total != hw:
        out_flat = out_flat[:, :, :hw]
    return out_flat.reshape(b, oc, h, w)


def _reference(x, conv_w, conv_b, bias, slope=0.2):
    """Pure-JAX reference mirroring the PyTorch module exactly."""
    y = jax.lax.conv_general_dilated(
        x, conv_w, window_strides=(1, 1), padding="VALID",
        dimension_numbers=("NCHW", "OIHW", "NCHW"))
    y = y + conv_b.reshape(1, -1, 1, 1) + bias
    return jnp.where(y >= 0.0, y, slope * y)


if __name__ == "__main__":
    # Module config: FromRGB(out_channels=8) applied to an RGB image.
    B, IC, OC, H, W = 2, 3, 8, 16, 16

    key = jax.random.PRNGKey(0)
    k1, k2, k3, k4 = jax.random.split(key, 4)

    x = jax.random.normal(k1, (B, IC, H, W), dtype=jnp.float32)
    conv_w = jax.random.normal(k2, (OC, IC, 1, 1), dtype=jnp.float32) * 0.2
    conv_b = jax.random.normal(k3, (OC,), dtype=jnp.float32) * 0.1
    # self.bias is zero-initialized in the module; use random values so the
    # extra-bias path is actually exercised.
    bias = jax.random.normal(k4, (1, OC, 1, 1), dtype=jnp.float32) * 0.1

    out = jax.block_until_ready(from_rgb(x, conv_w, conv_b, bias))
    ref = jax.block_until_ready(_reference(x, conv_w, conv_b, bias))

    assert out.shape == (B, OC, H, W)
    assert jnp.allclose(out, ref, atol=1e-5, rtol=1e-5), float(
        jnp.max(jnp.abs(out - ref)))

    print("KERNEL_OK")
</pallas_src>

<mosaic_0001>
module attributes {stable_mosaic.version = 11 : i64} {
  func.func @_fromrgb_kernel(%arg0: i32, %arg1: i32, %arg2: memref<1x3x256xf32, #tpu.memory_space<vmem>>, %arg3: memref<8x3xf32, #tpu.memory_space<vmem>>, %arg4: memref<8x1xf32, #tpu.memory_space<vmem>>, %arg5: memref<1x8x256xf32, #tpu.memory_space<vmem>>) attributes {dimension_semantics = [#tpu.dimension_semantics<parallel>, #tpu.dimension_semantics<parallel>], iteration_bounds = array<i64: 2, 1>, scalar_prefetch = 0 : i64, scratch_operands = 0 : i64, tpu.core_type = #tpu.core_type<tc>, window_params = [{transform_indices = @transform_0, window_bounds = array<i64: 1, 3, 256>}, {pipeline_mode = #tpu.pipeline_mode<synchronous>, transform_indices = @transform_1, window_bounds = array<i64: 8, 3>}, {pipeline_mode = #tpu.pipeline_mode<synchronous>, transform_indices = @transform_2, window_bounds = array<i64: 8, 1>}, {transform_indices = @transform_3, window_bounds = array<i64: 1, 8, 256>}]} {
    %c0 = arith.constant 0 : index
    %c0_0 = arith.constant 0 : index
    %c0_1 = arith.constant 0 : index
    %0 = vector.load %arg2[%c0, %c0_0, %c0_1] : memref<1x3x256xf32, #tpu.memory_space<vmem>>, vector<1x3x256xf32>
    %1 = vector.shape_cast %0 : vector<1x3x256xf32> to vector<3x256xf32>
    %c0_2 = arith.constant 0 : index
    %c0_3 = arith.constant 0 : index
    %2 = vector.load %arg3[%c0_2, %c0_3] : memref<8x3xf32, #tpu.memory_space<vmem>>, vector<8x3xf32>
    %3 = vector.extract_strided_slice %2 {offsets = [0, 0], sizes = [8, 1], strides = [1, 1]} : vector<8x3xf32> to vector<8x1xf32>
    %4 = vector.extract_strided_slice %1 {offsets = [0, 0], sizes = [1, 256], strides = [1, 1]} : vector<3x256xf32> to vector<1x256xf32>
    %5 = vector.broadcast %3 : vector<8x1xf32> to vector<8x256xf32>
    %6 = vector.broadcast %4 : vector<1x256xf32> to vector<8x256xf32>
    %7 = arith.mulf %5, %6 : vector<8x256xf32>
    %8 = vector.extract_strided_slice %2 {offsets = [0, 1], sizes = [8, 1], strides = [1, 1]} : vector<8x3xf32> to vector<8x1xf32>
    %9 = vector.extract_strided_slice %1 {offsets = [1, 0], sizes = [1, 256], strides = [1, 1]} : vector<3x256xf32> to vector<1x256xf32>
    %10 = vector.broadcast %8 : vector<8x1xf32> to vector<8x256xf32>
    %11 = vector.broadcast %9 : vector<1x256xf32> to vector<8x256xf32>
    %12 = arith.mulf %10, %11 : vector<8x256xf32>
    %13 = arith.addf %7, %12 : vector<8x256xf32>
    %14 = vector.extract_strided_slice %2 {offsets = [0, 2], sizes = [8, 1], strides = [1, 1]} : vector<8x3xf32> to vector<8x1xf32>
    %15 = vector.extract_strided_slice %1 {offsets = [2, 0], sizes = [1, 256], strides = [1, 1]} : vector<3x256xf32> to vector<1x256xf32>
    %16 = vector.broadcast %14 : vector<8x1xf32> to vector<8x256xf32>
    %17 = vector.broadcast %15 : vector<1x256xf32> to vector<8x256xf32>
    %18 = arith.mulf %16, %17 : vector<8x256xf32>
    %19 = arith.addf %13, %18 : vector<8x256xf32>
    %c0_4 = arith.constant 0 : index
    %c0_5 = arith.constant 0 : index
    %20 = vector.load %arg4[%c0_4, %c0_5] : memref<8x1xf32, #tpu.memory_space<vmem>>, vector<8x1xf32>
    %21 = vector.broadcast %20 : vector<8x1xf32> to vector<8x256xf32>
    %22 = arith.addf %19, %21 : vector<8x256xf32>
    %cst = arith.constant 0.000000e+00 : f32
    %23 = vector.broadcast %cst : f32 to vector<8x256xf32>
    %24 = arith.cmpf oge, %22, %23 : vector<8x256xf32>
    %cst_6 = arith.constant 2.000000e-01 : f32
    %25 = vector.broadcast %cst_6 : f32 to vector<8x256xf32>
    %26 = arith.mulf %22, %25 : vector<8x256xf32>
    %27 = arith.select %24, %22, %26 : vector<8x256xi1>, vector<8x256xf32>
    %c0_7 = arith.constant 0 : index
    %c0_8 = arith.constant 0 : index
    %c0_9 = arith.constant 0 : index
    %28 = vector.load %arg5[%c0_7, %c0_8, %c0_9] : memref<1x8x256xf32, #tpu.memory_space<vmem>>, vector<1x8x256xf32>
    %29 = vector.shape_cast %28 : vector<1x8x256xf32> to vector<8x256xf32>
    %30 = vector.shape_cast %27 : vector<8x256xf32> to vector<1x8x256xf32>
    tpu.vector_store %arg5[%c0_7, %c0_8, %c0_9], %30 {strides = array<i32>} : memref<1x8x256xf32, #tpu.memory_space<vmem>>, vector<1x8x256xf32>,
    return
  }
  func.func @transform_0(%arg0: i32, %arg1: i32) -> (i32, i32, i32) {
    %c0_i32 = arith.constant 0 : i32
    %c0_i32_0 = arith.constant 0 : i32
    return %arg0, %c0_i32, %arg1 : i32, i32, i32
  }
  func.func @transform_1(%arg0: i32, %arg1: i32) -> (i32, i32) {
    %c0_i32 = arith.constant 0 : i32
    %c0_i32_0 = arith.constant 0 : i32
    %c0_i32_1 = arith.constant 0 : i32
    return %c0_i32, %c0_i32_0 : i32, i32
  }
  func.func @transform_2(%arg0: i32, %arg1: i32) -> (i32, i32) {
    %c0_i32 = arith.constant 0 : i32
    %c0_i32_0 = arith.constant 0 : i32
    %c0_i32_1 = arith.constant 0 : i32
    return %c0_i32, %c0_i32_0 : i32, i32
  }
  func.func @transform_3(%arg0: i32, %arg1: i32) -> (i32, i32, i32) {
    %c0_i32 = arith.constant 0 : i32
    %c0_i32_0 = arith.constant 0 : i32
    return %arg0, %c0_i32, %arg1 : i32, i32, i32
  }
}

</mosaic_0001>

<bundles_post_ra>
// kernel: tpu_custom_call.1
= control target key start
LH: loop header
LB: loop body
LE: loop exit
PB: predicated region body
PF: predicated region fallthrough
CT: control target
= control target key end

     0   :  { %8 = vsyncpa [#allocation3], 0  ;;  %s643_s0 = inlined_call_operand.vmem [shape: f32[2,3,256], index: 0, kind: input, shape index: {}]   ;;  %s644_s1 = inlined_call_operand.vmem [shape: f32[8,3], index: 1, kind: input, shape index: {}]   ;;  %s645_s2 = inlined_call_operand.vmem [shape: f32[8,1], index: 2, kind: input, shape index: {}]   ;;  %s646_s3 = inlined_call_operand.hbm [shape: f32[2,8,256], index: 3, kind: output, shape index: {}]  }
   0x1   :  { %10 = vsyncpa [#allocation3 + $0x1], 0  ;;  %s536_s12 = smov 0   ;;  %s538_s13 = smov 0  }
   0x2   :  { %s540_s14 = smov 0   ;;  %s542_s15 = smov 0  }
   0x3   :  { %s544_s16 = smov 0   ;;  %s546_s17 = smov 0  }
   0x4 LB: > { %s355_s18 = sadd.s32 4294967295, %s511_s17   ;;  %s356_s19 = sadd.s32 4294967294, %s511_s17   ;;  %s511_s17 = sphi %s546_s17, %s16_s17   ;;  %s507_s16 = sphi %s544_s16, %s653_s16   ;;  %s503_s15 = sphi %s542_s15, %s652_s15   ;;  %s499_s14 = sphi %s540_s14, %s651_s14   ;;  %s495_s13 = sphi %s538_s13, %s650_s13   ;;  %s491_s12 = sphi %s536_s12, %s649_s12  }
   0x5   : > { %s28_s20 = sadd.s32 1, %s507_s16  ;;  %s107_s21 = sadd.s32 1, %s499_s14 }
   0x6   : > { %p30_p0 = scmp.ge.s32.totalorder %s28_s20, 2  ;;  %p117_p1 = scmp.ne.s32.totalorder %s499_s14, %s495_s13 }
   0x7   : > { %p118_p2 = scmp.eq.s32.totalorder %s355_s18, 1  ;;  %p123_p3 = scmp.ne.s32.totalorder %s495_s13, %s491_s12 }
   0x8   : > { %s655_s20 = smov (%p30_p0, %s28_s20), 0  ;;  %p124_p5 = scmp.eq.s32.totalorder %s356_s19, 1 }
   0x9   : > { %p576_p4 = por %p118_p2, %p117_p1  ;;  %s102_s23 = ssub.s32 %s507_s16, %s655_s20 }
   0xa   : > { %p359_p6 = scmp.ge.s32.totalorder %s511_s17, 1  ;;  %p105_p7 = scmp.eq.s32.totalorder %s102_s23, 0 }
   0xb   : > { %p583_p8 = por %p124_p5, %p123_p3  ;;  %p161_p9 = scmp.lt.s32.totalorder %s511_s17, 3 }
   0xc   : > { %s589_s25 = scalar_select %p105_p7, %s499_s14, %s107_s21  }
   0xd   : > { %p162_p10 = pnand %p359_p6, %p161_p9 }
   0xe   : > { %p190_p11 = scmp.lt.s32.totalorder (!%p162_p10), %s503_s15, 1  ;;  %s186_s8 = sand.u32 (!%p162_p10), 1, %s495_s13  }
   0xf   : > { %165 = sbr.rel (%p162_p10) target bundleno = 161 (0xa1), region = 32  ;;  %s360_s9 = sshll.u32 (!%p162_p10), %s186_s8, 4 }
  0x10   : > { %s369_s10 = sshll.u32 (!%p162_p10), %s503_s15, 4  ;;  %s188_s21 = scalar_lea.vmem (!%p162_p10), [#allocation2], %s360_s9 }
  0x11   : > { %s274_s19 = scalar_lea.hbm (!%p162_p10), %s646_s3, %s369_s10  ;;  %s276_s23 = sshll.u32 (!%p162_p10), %s188_s21, 4  ;;  %s277_s23 = int_to_ptr.vmem [resolvable:$true] %s276_s23 }
  0x12   : > { %s278_s26 = sshll.u32 (!%p162_p10), %s274_s19, 4  ;;  %s279_s26 = int_to_ptr.hbm [resolvable:$true] %s278_s26 }
  0x13   : > { %s447_s27 = sshra.s32 (!%p162_p10), %s279_s26, 4  ;;  %s448_s27 = int_to_ptr.hbm [resolvable:$true] %s447_s27 }
  0x14   : > { %v201_v0 = vld [vmem:[%s644_s1] sm:$0xff]  ;;  %v513_v1 = vmov 0   ;;  %v514_v2 = vmov 2   ;;  %v515_v4 = vmov 1   ;;  %s191_s30 = scalar_select %p190_p11, %s503_s15, 1 }
  0x15   : > { %428 = vset.pattern.permute.xlu0 %v513_v1  ;;  %430 = vset.pattern.permute.xlu1 %v514_v2  ;;  %v244_v3 = vld [vmem:[%s645_s2] sm:$0xff]  ;;  %s261_s15 = scalar_lea.sflag [#allocation3], %s186_s8  ;;  %s449_s28 = scalar_lea.hbm %s448_s27, 16 }
  0x16   : > { %204 = vperm.xlu0 %428, %v201_v0   ;;  %231 = vperm.xlu1 %430, %v201_v0   ;;  %s368_s4 = sshll.u32 %s191_s30, 3  ;;  %p450_p12 = scmp.ne.s32.totalorder %s448_s27, %s449_s28 }
  0x17   : > { %s197_s7 = scalar_lea.vmem %s643_s0, %s368_s4  ;;  %s453_s4 = scalar_lea.hbm %s646_s3, 32 }
  0x18   : > { %v200_v5 = vld [vmem:[%s197_s7] sm:$0x77]  ;;  %p451_p13 = pnand %p450_p12, %p576_p4  ;;  %p454_p1 = scmp.lt.s32.totalorder %s448_s27, %s646_s3 }
  0x19   : > { %v208_v7 = vperm.slane %v200_v5, 0  ;;  %v209_v8 = vperm.slane %v200_v5, 4  ;;  %v220_v9 = vperm.slane %v200_v5, 1  ;;  %v221_v10 = vperm.slane %v200_v5, 5  ;;  %p455_p2 = scmp.lt.s32.totalorder %s453_s4, %s449_s28 }
  0x1a   : > { %v234_v12 = vperm.slane %v200_v5, 2  ;;  %v235_v13 = vperm.slane %v200_v5, 6  ;;  %p452_p0 = pneg %p451_p13 }
  0x1b   : > { %v212_v14 = vperm.slane %v208_v7, 0  ;;  %v213_v15 = vperm.slane %v209_v8, 0  ;;  %v224_v16 = vperm.slane %v220_v9, 1  ;;  %v225_v17 = vperm.slane %v221_v10, 1  ;;  %p456_p3 = por %p455_p2, %p454_p1 }
  0x1c   : > { %v238_v18 = vperm.slane %v234_v12, 2  ;;  %v239_v19 = vperm.slane %v235_v13, 2 }
  0x1d   : > { %p457_p5 = pnand %p456_p3, %p452_p0 }
  0x1e   : > { %429 = vset.pattern.permute.xlu0 %v515_v4  ;;  %431 = vset.pattern.permute.xlu1 %v513_v1 }
  0x1f   : > { %217 = vperm.xlu0 %429, %v201_v0   ;;  %247 = vperm.xlu1 %431, %v244_v3  }
  0x27   : > { %432 = vset.pattern.permute.xlu0 %v513_v1 }
  0x88   : > { %v205_v6 = vpop.permute.xlu0 %204  ;;  %v232_v11 = vpop.permute.xlu1 %231 }
  0x89   : > { %v214_v21 = vmul.f32 %v212_v14, %v205_v6  ;;  %v215_v22 = vmul.f32 %v213_v15, %v205_v6  ;;  %v240_v25 = vmul.f32 %v238_v18, %v232_v11  ;;  %v241_v26 = vmul.f32 %v239_v19, %v232_v11 }
  0x91   : > { %v218_v20 = vpop.permute.xlu0 %217  ;;  %v248_v29 = vpop.permute.xlu1 %247 }
  0x92   : > { %v226_v23 = vmul.f32 %v224_v16, %v218_v20  ;;  %v227_v24 = vmul.f32 %v225_v17, %v218_v20 }
  0x94   : > { %v228_v27 = vadd.f32 %v226_v23, %v214_v21  ;;  %v229_v28 = vadd.f32 %v227_v24, %v215_v22 }
  0x96   : > { %v242_v30 = vadd.f32 %v240_v25, %v228_v27  ;;  %v243_v31 = vadd.f32 %v241_v26, %v229_v28 }
  0x98   : > { %v250_v32 = vadd.f32 %v248_v29, %v242_v30  ;;  %v251_v33 = vadd.f32 %v248_v29, %v243_v31 }
  0x9a   : > { %vm252_vm0 = vcmp.ge.f32.partialorder %v250_v32, 0.0  ;;  %vm253_vm1 = vcmp.ge.f32.partialorder %v251_v33, 0.0  ;;  %v254_v34 = vmul.f32 0.2, %v250_v32  ;;  %v255_v35 = vmul.f32 0.2, %v251_v33 }
  0x9c   : > { %v256_v36 = vsel %vm252_vm0, %v250_v32, %v254_v34  ;;  %v257_v37 = vsel %vm253_vm1, %v251_v33, %v255_v35 }
  0x9d   : > { %258 = vst [vmem:[%s188_s21] sm:$0xff] %v256_v36 }
  0x9e   : > { %259 = vst [vmem:[%s188_s21 + $0x8] sm:$0xff] %v257_v37 }
  0x9f   : > { %460 = shalt.err (!%p457_p5)
}
  0xa0   : > { %370 = dma.vmem_to_hbm [thread:$0]  (%p576_p4), %s277_s23, 256, %s279_s26, %s261_s15  }
  0xa1 PF: > { %p376_p6 = scmp.ge.s32.totalorder %s511_s17, 2  ;;  %s290_s7 = sand.u32 1, %s491_s12  }
  0xa2   : > { %s291_s8 = scalar_lea.sflag [#allocation3], %s290_s7 }
  0xa3   : > { %p373_p7 = pnand %p376_p6, %p583_p8 }
  0xa5   : > { %p374_p9 = pneg %p373_p7 }
  0xa7   : > { %486 = dma.done.wait (%p374_p9), %s291_s8, 256  }
  0xa8   : > { %488 = vsyncadd (%p374_p9), %s291_s8, 4294967040  ;;  %s16_s17 = sadd.s32 1, %s511_s17   ;;  %s649_s12 = smov %s495_s13 }
  0xa9   : > { %p13_p10 = scmp.ge.s32.totalorder %s16_s17, 4   ;;  %s650_s13 = smov %s499_s14 }
  0xaa   : > { %s651_s14 = smov %s589_s25  ;;  %s652_s15 = smov %s507_s16 }
  0xab   : > { %s653_s16 = smov %s655_s20  ;;  %15 = sbr.rel (!%p13_p10) target bundleno = 4 (0x4), region = 67 }
  0xb0   :  { %297 = vsyncpa [#allocation3], 1 }
  0xb1   :  { %299 = vsyncpa [#allocation3 + $0x1], 1 }

</bundles_post_ra>
